<compile_context>
chip_gen: v7x
topology: tpu7x:2x2x1
jax: 0.10.0
libtpu: 0.0.40
codegen_flags: <defaults>
</compile_context>

<pallas_src>
import jax
import jax.numpy as jnp
import numpy as np
from jax.experimental import pallas as pl
from jax.experimental.pallas import tpu as pltpu


def nw_regression_kernel(w_ref, q_ref, k_ref, v_ref, o_ref):
    """One row-tile of Nadaraya-Watson regression in the inputs' native layout.

    w_ref: (1,) f32 in SMEM        -- bandwidth parameter
    q_ref: (tile_n, 1) in VMEM     -- one query per example row
    k_ref: (tile_n, m) in VMEM     -- keys   (native dtype/layout, m on lanes)
    v_ref: (tile_n, m) in VMEM     -- values (native dtype/layout)
    o_ref: (tile_n, 1) f32 in VMEM -- softmax-weighted sum per row
    """
    w = w_ref[0].astype(jnp.float32)
    c = -0.5 * w * w                                   # fold bandwidth into one scalar
    q = q_ref[...].astype(jnp.float32)                 # (tile_n, 1)
    k = k_ref[...].astype(jnp.float32)                 # (tile_n, m)
    v = v_ref[...].astype(jnp.float32)                 # (tile_n, m)
    d = q - k                                          # query broadcast along lanes
    scores = d * d * c                                 # (tile_n, m), all <= 0
    # numerically-stable softmax along the training axis (lane reduce)
    s_max = jnp.max(scores, axis=1, keepdims=True)     # (tile_n, 1)
    e = jnp.exp(scores - s_max)                        # (tile_n, m)
    num = jnp.sum(e * v, axis=1, keepdims=True)        # (tile_n, 1)
    den = jnp.sum(e, axis=1, keepdims=True)            # (tile_n, 1), >= 1
    o_ref[...] = num * pl.reciprocal(den, approx=False)


def _pick_tile_n(n, m, in_itemsize):
    """Rows (examples) per grid step.

    VMEM accounting per review: 2 streamed inputs x 2 pipeline buffers in their
    native dtype + ~3 f32 block-sized temporaries (d/scores, e, e*v), all with
    the lane (m) axis padded to a multiple of 128 in VMEM.  Budget ~40 MiB so
    the total stays comfortably under v7x's 64 MiB (v5e/v6e have 128 MiB)."""
    m_pad = ((m + 127) // 128) * 128
    per_row_bytes = m_pad * (2 * 2 * in_itemsize + 3 * 4)
    budget = 40 << 20
    tile = max(8, (budget // per_row_bytes) // 8 * 8)
    # v7x megacore: keep >= 2 grid steps so ("parallel",) can use both TCs.
    half = max(8, ((-(-n // 2)) + 7) // 8 * 8)
    tile = min(tile, half)
    # never wider than the 8-padded problem
    n_pad = ((n + 7) // 8) * 8
    return min(tile, n_pad)


def nw_kernel_regression(queries, keys, values, w, *, tile_n=None):
    queries = jnp.reshape(queries, (-1,))
    n, m = keys.shape
    assert queries.shape == (n,)
    assert values.shape == (n, m)

    if tile_n is None:
        tile_n = _pick_tile_n(n, m, jnp.dtype(keys.dtype).itemsize)
    assert tile_n % 8 == 0 or tile_n == n

    num_blocks = pl.cdiv(n, tile_n)

    # (n,) -> (n, 1) is metadata-only; keys/values are passed straight through
    # (no transpose, no zero-pad, no dtype cast -> no extra HBM pass).
    q_col = jnp.reshape(queries, (n, 1))
    w = jnp.asarray(w, dtype=jnp.float32).reshape((1,))

    out = pl.pallas_call(
        nw_regression_kernel,
        # Output padded to whole blocks so the ragged tail never relies on
        # out-of-bounds write masking; padding rows are sliced off below.
        out_shape=jax.ShapeDtypeStruct((num_blocks * tile_n, 1), jnp.float32),
        grid=(num_blocks,),
        in_specs=[
            pl.BlockSpec(memory_space=pltpu.MemorySpace.SMEM),   # w, untiled scalar
            pl.BlockSpec((tile_n, 1), lambda i: (i, 0)),         # queries column
            pl.BlockSpec((tile_n, m), lambda i: (i, 0)),         # keys (native layout)
            pl.BlockSpec((tile_n, m), lambda i: (i, 0)),         # values (native layout)
        ],
        out_specs=pl.BlockSpec((tile_n, 1), lambda i: (i, 0)),
        compiler_params=pltpu.CompilerParams(
            dimension_semantics=("parallel",),   # >=2 steps -> both v7x TCs busy
            vmem_limit_bytes=56 << 20,           # above default scoped limits, < v7x 64 MiB
        ),
    )(w, q_col, keys, values)
    return out[:n, 0]


def nw_kernel_regression_ref(queries, keys, values, w):
    """Pure-JAX reference matching the PyTorch forward exactly."""
    n, m = keys.shape
    q = jnp.repeat(queries, m).reshape(n, m)
    attn = jax.nn.softmax(-((q - keys) * w[0]) ** 2 / 2, axis=1)
    return jnp.einsum("nm,nm->n", attn, values)


if __name__ == "__main__":
    key = jax.random.PRNGKey(0)
    k_w, k_k, k_v = jax.random.split(key, 3)

    # Shapes mirroring the d2l NW-regression setup: 50 test queries (arange(0,5,0.1)),
    # 50 training (key, value) pairs repeated per query.
    n_queries, n_train = 50, 50

    # Parameter: torch.rand((1,)) -> uniform [0, 1)
    w = jax.random.uniform(k_w, (1,), dtype=jnp.float32)

    queries = jnp.arange(0, 5, 0.1, dtype=jnp.float32)                          # x_test
    keys = jax.random.uniform(k_k, (n_queries, n_train), dtype=jnp.float32) * 5.0
    values = jax.random.normal(k_v, (n_queries, n_train), dtype=jnp.float32)

    out = nw_kernel_regression(queries, keys, values, w)
    out = jax.block_until_ready(out)

    ref = nw_kernel_regression_ref(queries, keys, values, w)
    np.testing.assert_allclose(np.asarray(out), np.asarray(ref), rtol=1e-5, atol=1e-5)

    print("KERNEL_OK")
</pallas_src>

<mosaic_0001>
module attributes {stable_mosaic.version = 11 : i64} {
  func.func @nw_regression_kernel(%arg0: i32, %arg1: memref<1xf32, #tpu.memory_space<smem>>, %arg2: memref<32x1xf32, #tpu.memory_space<vmem>>, %arg3: memref<32x50xf32, #tpu.memory_space<vmem>>, %arg4: memref<32x50xf32, #tpu.memory_space<vmem>>, %arg5: memref<32x1xf32, #tpu.memory_space<vmem>>) attributes {dimension_semantics = [#tpu.dimension_semantics<parallel>], iteration_bounds = array<i64: 2>, scalar_prefetch = 0 : i64, scratch_operands = 0 : i64, tpu.core_type = #tpu.core_type<tc>, window_params = [{transform_indices = @transform_0, window_bounds = array<i64: 1>}, {transform_indices = @transform_1, window_bounds = array<i64: 32, 1>}, {transform_indices = @transform_2, window_bounds = array<i64: 32, 50>}, {transform_indices = @transform_3, window_bounds = array<i64: 32, 50>}, {transform_indices = @transform_4, window_bounds = array<i64: 32, 1>}]} {
    %c0 = arith.constant 0 : index
    %0 = memref.load %arg1[%c0] : memref<1xf32, #tpu.memory_space<smem>>
    %cst = arith.constant -5.000000e-01 : f32
    %1 = arith.mulf %cst, %0 : f32
    %2 = arith.mulf %1, %0 : f32
    %c0_0 = arith.constant 0 : index
    %c0_1 = arith.constant 0 : index
    %3 = vector.load %arg2[%c0_0, %c0_1] : memref<32x1xf32, #tpu.memory_space<vmem>>, vector<32x1xf32>
    %c0_2 = arith.constant 0 : index
    %c0_3 = arith.constant 0 : index
    %4 = vector.load %arg3[%c0_2, %c0_3] : memref<32x50xf32, #tpu.memory_space<vmem>>, vector<32x50xf32>
    %c0_4 = arith.constant 0 : index
    %c0_5 = arith.constant 0 : index
    %5 = vector.load %arg4[%c0_4, %c0_5] : memref<32x50xf32, #tpu.memory_space<vmem>>, vector<32x50xf32>
    %6 = vector.broadcast %3 : vector<32x1xf32> to vector<32x50xf32>
    %7 = arith.subf %6, %4 : vector<32x50xf32>
    %8 = arith.mulf %7, %7 : vector<32x50xf32>
    %9 = vector.broadcast %2 : f32 to vector<32x50xf32>
    %10 = arith.mulf %8, %9 : vector<32x50xf32>
    %cst_6 = arith.constant dense<0xFF800000> : vector<32xf32>
    %11 = vector.multi_reduction <maximumf>, %10, %cst_6 [1] : vector<32x50xf32> to vector<32xf32>
    %12 = vector.shape_cast %11 : vector<32xf32> to vector<32x1xf32>
    %13 = vector.broadcast %12 : vector<32x1xf32> to vector<32x50xf32>
    %14 = arith.subf %10, %13 : vector<32x50xf32>
    %15 = math.exp %14 : vector<32x50xf32>
    %16 = arith.mulf %15, %5 : vector<32x50xf32>
    %cst_7 = arith.constant dense<0.000000e+00> : vector<32xf32>
    %17 = vector.multi_reduction <add>, %16, %cst_7 [1] : vector<32x50xf32> to vector<32xf32>
    %18 = vector.shape_cast %17 : vector<32xf32> to vector<32x1xf32>
    %cst_8 = arith.constant dense<0.000000e+00> : vector<32xf32>
    %19 = vector.multi_reduction <add>, %15, %cst_8 [1] : vector<32x50xf32> to vector<32xf32>
    %20 = vector.shape_cast %19 : vector<32xf32> to vector<32x1xf32>
    %21 = tpu.reciprocal %20 : vector<32x1xf32> -> vector<32x1xf32>
    %22 = arith.mulf %18, %21 : vector<32x1xf32>
    %c0_9 = arith.constant 0 : index
    %c0_10 = arith.constant 0 : index
    %23 = vector.load %arg5[%c0_9, %c0_10] : memref<32x1xf32, #tpu.memory_space<vmem>>, vector<32x1xf32>
    tpu.vector_store %arg5[%c0_9, %c0_10], %22 {strides = array<i32>} : memref<32x1xf32, #tpu.memory_space<vmem>>, vector<32x1xf32>,
    return
  }
  func.func @transform_0(%arg0: i32) -> i32 {
    %c0_i32 = arith.constant 0 : i32
    %c0_i32_0 = arith.constant 0 : i32
    return %c0_i32 : i32
  }
  func.func @transform_1(%arg0: i32) -> (i32, i32) {
    %c0_i32 = arith.constant 0 : i32
    %c0_i32_0 = arith.constant 0 : i32
    return %arg0, %c0_i32 : i32, i32
  }
  func.func @transform_2(%arg0: i32) -> (i32, i32) {
    %c0_i32 = arith.constant 0 : i32
    %c0_i32_0 = arith.constant 0 : i32
    return %arg0, %c0_i32 : i32, i32
  }
  func.func @transform_3(%arg0: i32) -> (i32, i32) {
    %c0_i32 = arith.constant 0 : i32
    %c0_i32_0 = arith.constant 0 : i32
    return %arg0, %c0_i32 : i32, i32
  }
  func.func @transform_4(%arg0: i32) -> (i32, i32) {
    %c0_i32 = arith.constant 0 : i32
    %c0_i32_0 = arith.constant 0 : i32
    return %arg0, %c0_i32 : i32, i32
  }
}

</mosaic_0001>

<bundles_post_ra>
// kernel: tpu_custom_call.1
= control target key start
LH: loop header
LB: loop body
LE: loop exit
PB: predicated region body
PF: predicated region fallthrough
CT: control target
= control target key end

     0   :  { %s828_s0 = inlined_call_operand.<no memory space> [shape: f32[1], index: 0, kind: input, shape index: {}]   ;;  %s829_s1 = inlined_call_operand.vmem [shape: f32[50,1], index: 1, kind: input, shape index: {}]   ;;  %s830_s2 = inlined_call_operand.vmem [shape: f32[50,50], index: 2, kind: input, shape index: {}]   ;;  %s831_s3 = inlined_call_operand.hbm [shape: f32[50,50], index: 3, kind: input, shape index: {}]   ;;  %s832_s4 = inlined_call_operand.vmem [shape: f32[64,1], index: 4, kind: output, shape index: {}]  }
   0x1   :  { %9 = sst [smem:[#allocation2]] %s828_s0 }
   0x2   :  { %10 = vsyncpa [#allocation4], 0 }
   0x3   :  { %12 = vsyncpa [#allocation4 + $0x1], 0  ;;  %s692_s17 = smov 0   ;;  %s694_s18 = smov 0  }
   0x4   :  { %s696_s19 = smov 0   ;;  %s698_s20 = smov 0  }
   0x5 LB: > { %s520_s0 = sadd.s32 4294967295, %s658_s20   ;;  %s712_s21 = sadd.s32 1, %s658_s20   ;;  %s658_s20 = sphi %s698_s20, %s837_s20   ;;  %s654_s19 = sphi %s696_s19, %s836_s19   ;;  %s650_s18 = sphi %s694_s18, %s835_s18   ;;  %s646_s17 = sphi %s692_s17, %s834_s17  }
   0x6   : > { %s95_s22 = ssub.s32 %s658_s20, %s712_s21  ;;  %s98_s23 = sadd.s32 1, %s654_s19 }
   0x7   : > { %p96_p0 = scmp.eq.s32.totalorder %s95_s22, 0  ;;  %p105_p1 = scmp.ne.s32.totalorder %s654_s19, %s650_s18 }
   0x8   : > { %p106_p2 = scmp.eq.s32.totalorder %s658_s20, 0  ;;  %p111_p3 = scmp.ne.s32.totalorder %s650_s18, %s646_s17 }
   0x9   : > { %s722_s24 = scalar_select %p96_p0, %s654_s19, %s98_s23  }
   0xa   : > { %p107_p4 = por %p106_p2, %p105_p1  ;;  %p112_p5 = scmp.eq.s32.totalorder %s520_s0, 0 }
   0xb   : > { %p523_p7 = scmp.ge.s32.totalorder %s658_s20, 2 }
   0xc   : > { %p726_p6 = por %p112_p5, %p111_p3 }
   0xd   : > { %160 = sbr.rel (%p523_p7) target bundleno = 55 (0x37), region = 20 }
  0x14   : > { %197 = sbr.rel (!%p107_p4) target bundleno = 55 (0x37), region = 32  ;;  %s198_s26 = sand.u32 (%p107_p4), 1, %s654_s19  }
  0x15   : > { %s525_s27 = sshll.u32 (%p107_p4), %s658_s20, 2  ;;  %s524_s28 = sshll.u32 (%p107_p4), %s198_s26, 5 }
  0x16   : > { %s204_s29 = ssub.s32 (%p107_p4), 7, %s525_s27  ;;  %s736_s6 = scalar_lea.sflag (%p107_p4), [#allocation4], %s198_s26 }
  0x17   : > { %p205_p8 = scmp.lt.s32.totalorder (%p107_p4), %s204_s29, 4  ;;  %s202_s7 = scalar_lea.vmem (%p107_p4), [#allocation3], %s524_s28 }
  0x1b   : > { %s839_s29 = smov (!%p205_p8, %s204_s29), 4 }
  0x1c   : > { %s733_s30 = sshll.u32 %s839_s29, 7 }
  0x1d   : > { %s209_s5 = ssub.s32 512, %s733_s30 }
  0x1e   : > { %210 = vsyncadd %s736_s6, %s209_s5  ;;  %p527_p9 = scmp.ne.s32.totalorder %s733_s30, 0  ;;  %s541_s8 = sshll.u32 %s658_s20, 9 }
  0x1f   : > { %s744_s11 = scalar_lea.hbm %s831_s3, %s541_s8  ;;  %s215_s12 = sshll.u32 %s202_s7, 4  ;;  %s746_s12 = int_to_ptr.vmem [resolvable:$true] %s215_s12 }
  0x20   : > { %s596_s13 = scalar_lea.hbm %s744_s11, %s733_s30  ;;  %s600_s16 = scalar_lea.hbm %s831_s3, 896 }
  0x21   : > { %p597_p10 = scmp.ne.s32.totalorder %s744_s11, %s596_s13  ;;  %p601_p13 = scmp.lt.u32.totalorder %s744_s11, %s831_s3 }
  0x22   : > { %p602_p0 = scmp.lt.u32.totalorder %s600_s16, %s596_s13  ;;  %p604_p2 = scmp.lt.u32.totalorder %s596_s13, %s744_s11 }
  0x23   : > { %p598_p11 = pnand %p597_p10, %p527_p9 }
  0x24   : > { %p603_p1 = por %p602_p0, %p601_p13 }
  0x25   : > { %p599_p12 = pneg %p598_p11 }
  0x26   : > { %p605_p3 = por %p604_p2, %p603_p1 }
  0x28   : > { %p606_p4 = pnand %p605_p3, %p599_p12 }
  0x2a   : > { %609 = shalt.err (!%p606_p4)
}
  0x2b   : > { %s610_s23 = scalar_lea.vmem %s746_s12, %s733_s30  ;;  %s660_s26 = smov [#allocation3]  }
  0x2c   : > { %p611_p5 = scmp.ne.s32.totalorder %s746_s12, %s610_s23  ;;  %s614_s27 = sshll.u32 %s660_s26, 4  ;;  %s615_s27 = int_to_ptr.vmem [resolvable:$false] %s614_s27 }
  0x2d   : > { %s616_s28 = scalar_lea.vmem %s615_s27, 1024  ;;  %p617_p10 = scmp.lt.s32.totalorder %s746_s12, %s615_s27 }
  0x2e   : > { %p612_p7 = pnand %p611_p5, %p527_p9  ;;  %p618_p11 = scmp.lt.s32.totalorder %s616_s28, %s610_s23 }
  0x30   : > { %p613_p8 = pneg %p612_p7  ;;  %p619_p13 = por %p618_p11, %p617_p10 }
  0x32   : > { %p620_p0 = pnand %p619_p13, %p613_p8 }
  0x34   : > { %623 = shalt.err (!%p620_p0)
}
  0x35   : > { %s661_s29 = smov 128   ;;  %s662_s5 = smov 8  }
  0x36   : > { %221 = dma.hbm_to_vmem [thread:$0]  (%p527_p9), %s744_s11, %s733_s30, %s746_s12, %s736_s6, %s661_s29, %s661_s29, %s662_s5  }
  0x37 PF: > { %p531_p12 = scmp.ge.s32.totalorder %s658_s20, 1  ;;  %p223_p1 = scmp.lt.s32.totalorder %s658_s20, 3 }
  0x39   : > { %p224_p2 = pnand %p531_p12, %p223_p1 }
  0x3a   : > { %s229_s7 = sand.u32 (!%p224_p2), 1, %s650_s18  }
  0x3b   : > { %227 = sbr.rel (%p224_p2) target bundleno = 532 (0x214), region = 36  ;;  %s532_s8 = sshll.u32 (!%p224_p2), %s229_s7, 5 }
  0x3c   : > { %s230_s9 = scalar_lea.sflag (!%p224_p2), [#allocation4], %s229_s7  ;;  %s776_s10 = scalar_lea.vmem (!%p224_p2), [#allocation3], %s532_s8 }
  0x42   : > { %641 = dma.done.wait (%p726_p6), %s230_s9, 512  }
  0x43   : > { %643 = vsyncadd (%p726_p6), %s230_s9, 4294966784  ;;  %s784_s30 = sshll.u32 %s520_s0, 2  ;;  %v663_v0 = vmov 0   ;;  %s315_s20 = sld [smem:[#allocation2]]  ;;  %vm363_vm0 = vcmask 408576   ;;  %v326_v44 = vld [vmem:[%s776_s10] sm:$0xff] }
  0x44   : > { %579 = vset.pattern.permute.xlu1 %v663_v0  ;;  %578 = vset.pattern.permute.xlu0 %v663_v0  ;;  %p281_p9 = scmp.lt.s32.totalorder %s784_s30, 6  ;;  %v327_v50 = vld [vmem:[%s776_s10 + $0x8] sm:$0xff]  ;;  %v328_v51 = vld [vmem:[%s776_s10 + $0x10] sm:$0xff]  ;;  %v329_v57 = vld [vmem:[%s776_s10 + $0x18] sm:$0xff]  ;;  %p310_p6 = scmp.lt.s32.totalorder %s784_s30, 7  ;;  %vm424_vm1 = vcmask 7168  }
  0x46   : > { %s282_s6 = scalar_select %p281_p9, %s784_s30, 6 }
  0x47   : > { %s841_s30 = smov (!%p310_p6, %s784_s30), 7 }
  0x48   : > { %s534_s11 = sshll.u32 %s282_s6, 3  ;;  %s538_s22 = sshll.u32 %s841_s30, 3 }
  0x49   : > { %s284_s14 = scalar_lea.vmem %s829_s1, %s534_s11  ;;  %s316_s0 = smul.f32 -0.5, %s315_s20 }
  0x4a   : > { %v320_v1 = vld [vmem:[%s284_s14 + $0x10] sm:$0xff]  ;;  %v318_v2 = vld [vmem:[%s284_s14] sm:$0xff]  ;;  %v321_v3 = vld [vmem:[%s284_s14 + $0x18] sm:$0xff]  ;;  %s298_s16 = scalar_lea.vmem %s830_s2, %s534_s11  ;;  %s313_s27 = scalar_lea.vmem %s832_s4, %s538_s22 }
  0x4b   : > { %342 = vperm.xlu1 %579, %v320_v1   ;;  %332 = vperm.xlu0 %578, %v318_v2   ;;  %v319_v4 = vld [vmem:[%s284_s14 + $0x8] sm:$0xff]  ;;  %v324_v5 = vld [vmem:[%s298_s16 + $0x10] sm:$0xff]  ;;  %v322_v6 = vld [vmem:[%s298_s16] sm:$0xff]  ;;  %s317_s17 = smul.f32 %s316_s0, %s315_s20 }
  0x4c   : > { %v325_v11 = vld [vmem:[%s298_s16 + $0x18] sm:$0xff]  ;;  %v323_v12 = vld [vmem:[%s298_s16 + $0x8] sm:$0xff] }
  0x4d   : > { %v358_v13 = vstv %s317_s17 }
  0x4f   : > { %347 = vperm.xlu1 %579, %v321_v3   ;;  %337 = vperm.xlu0 %578, %v319_v4  }
  0xca   : > { %v343_v7 = vpop.permute.xlu1 %342  ;;  %v333_v8 = vpop.permute.xlu0 %332 }
  0xcb   : > { %v352_v9 = vsub.f32 %v343_v7, %v324_v5  ;;  %v350_v10 = vsub.f32 %v333_v8, %v322_v6 }
  0xcd   : > { %v356_v14 = vmul.f32 %v352_v9, %v352_v9  ;;  %v354_v15 = vmul.f32 %v350_v10, %v350_v10 }
  0xce   : > { %v348_v16 = vpop.permute.xlu1 %347  ;;  %v338_v17 = vpop.permute.xlu0 %337 }
  0xcf   : > { %v353_v18 = vsub.f32 %v348_v16, %v325_v11  ;;  %v351_v19 = vsub.f32 %v338_v17, %v323_v12  ;;  %v359_v20 = vmul.f32 %v358_v13, %v354_v15  ;;  %v361_v21 = vmul.f32 %v358_v13, %v356_v14 }
  0xd1   : > { %v357_v22 = vmul.f32 %v353_v18, %v353_v18  ;;  %v355_v23 = vmul.f32 %v351_v19, %v351_v19  ;;  %v364_v24 = vsel %vm363_vm0, %v359_v20, -inf  ;;  %v370_v26 = vsel %vm363_vm0, %v361_v21, -inf }
  0xd2   : > { %365 = vmax.xlane.f32.xlu0 %v364_v24 }
  0xd3   : > { %v360_v25 = vmul.f32 %v358_v13, %v355_v23  ;;  %v362_v28 = vmul.f32 %v358_v13, %v357_v22 }
  0xd5   : > { %v367_v27 = vsel %vm363_vm0, %v360_v25, -inf  ;;  %v373_v29 = vsel %vm363_vm0, %v362_v28, -inf }
  0xd6   : > { %368 = vmax.xlane.f32.xlu1 %v367_v27  ;;  %371 = vmax.xlane.f32.xlu0 %v370_v26 }
  0xda   : > { %374 = vmax.xlane.f32.xlu0 %v373_v29 }
 0x15f   : > { %v366_v30 = vpop.xlane.xlu0 %365 }
 0x160   : > { %v376_v31 = vsub.f32 %v359_v20, %v366_v30 }
 0x162   : > { %v380_v32 = vmul.f32 1.442695, %v376_v31 }
 0x163   : > { %v369_v33 = vpop.xlane.xlu1 %368  ;;  %v372_v34 = vpop.xlane.xlu0 %371 }
 0x164   : > { %580 = vpow2.f32 %v380_v32  ;;  %v377_v35 = vsub.f32 %v360_v25, %v369_v33  ;;  %v378_v36 = vsub.f32 %v361_v21, %v372_v34 }
 0x166   : > { %v382_v37 = vmul.f32 1.442695, %v377_v35  ;;  %v384_v38 = vmul.f32 1.442695, %v378_v36 }
 0x167   : > { %v375_v39 = vpop.xlane.xlu0 %374 }
 0x168   : > { %582 = vpow2.f32 %v382_v37  ;;  %v379_v40 = vsub.f32 %v362_v28, %v375_v39 }
 0x169   : > { %584 = vpow2.f32 %v384_v38 }
 0x16a   : > { %v386_v41 = vmul.f32 1.442695, %v379_v40 }
 0x16c   : > { %586 = vpow2.f32 %v386_v41 }
 0x16e   : > { %v581_v42 = vpop.eup %580 }
 0x16f   : > { %v404_v43 = vsel %vm363_vm0, %v581_v42, 0.0  ;;  %v388_v49 = vmul.f32 %v581_v42, %v326_v44 }
 0x170   : > { %405 = vadd.xlane.f32.xlu1 %v404_v43 }
 0x171   : > { %v392_v55 = vsel %vm363_vm0, %v388_v49, 0.0 }
 0x172   : > { %v583_v45 = vpop.eup %582 }
 0x173   : > { %v585_v46 = vpop.eup %584  ;;  %v407_v47 = vsel %vm363_vm0, %v583_v45, 0.0  ;;  %v389_v54 = vmul.f32 %v583_v45, %v327_v50 }
 0x174   : > { %408 = vadd.xlane.f32.xlu0 %v407_v47  ;;  %v410_v48 = vsel %vm363_vm0, %v585_v46, 0.0  ;;  %v390_v56 = vmul.f32 %v585_v46, %v328_v51 }
 0x175   : > { %411 = vadd.xlane.f32.xlu1 %v410_v48  ;;  %v395_v58 = vsel %vm363_vm0, %v389_v54, 0.0 }
 0x176   : > { %v587_v52 = vpop.eup %586  ;;  %v398_v60 = vsel %vm363_vm0, %v390_v56, 0.0 }
 0x177   : > { %v413_v53 = vsel %vm363_vm0, %v587_v52, 0.0  ;;  %v391_v59 = vmul.f32 %v587_v52, %v329_v57 }
 0x178   : > { %414 = vadd.xlane.f32.xlu0 %v413_v53 }
 0x179   : > { %393 = vadd.xlane.f32.xlu1 %v392_v55  ;;  %v401_v61 = vsel %vm363_vm0, %v391_v59, 0.0 }
 0x17c   : > { %396 = vadd.xlane.f32.xlu0 %v395_v58 }
 0x17d   : > { %399 = vadd.xlane.f32.xlu1 %v398_v60 }
 0x180   : > { %402 = vadd.xlane.f32.xlu0 %v401_v61 }
 0x1fd   : > { %v406_v62 = vpop.xlane.xlu1 %405 }
 0x1fe   : > { %588 = vrcp.f32 %v406_v62 }
 0x201   : > { %v409_v63 = vpop.xlane.xlu0 %408 }
 0x202   : > { %v412_v0 = vpop.xlane.xlu1 %411  ;;  %590 = vrcp.f32 %v409_v63 }
 0x203   : > { %592 = vrcp.f32 %v412_v0 }
 0x205   : > { %v415_v1 = vpop.xlane.xlu0 %414 }
 0x206   : > { %594 = vrcp.f32 %v415_v1  ;;  %v394_v2 = vpop.xlane.xlu1 %393 }
 0x208   : > { %v589_v3 = vpop.eup %588 }
 0x209   : > { %v420_v4 = vmul.f32 %v589_v3, %v394_v2  ;;  %v397_v5 = vpop.xlane.xlu0 %396 }
 0x20a   : > { %v400_v8 = vpop.xlane.xlu1 %399 }
 0x20b   : > { %425 = vst.msk [vmem:[%s313_s27] sm:$0xff] %vm424_vm1, %v420_v4 }
 0x20c   : > { %v591_v6 = vpop.eup %590 }
 0x20d   : > { %v593_v7 = vpop.eup %592  ;;  %v421_v9 = vmul.f32 %v591_v6, %v397_v5  ;;  %v403_v12 = vpop.xlane.xlu0 %402 }
 0x20e   : > { %v422_v10 = vmul.f32 %v593_v7, %v400_v8 }
 0x20f   : > { %426 = vst.msk [vmem:[%s313_s27 + $0x8] sm:$0xff] %vm424_vm1, %v421_v9 }
 0x210   : > { %v595_v11 = vpop.eup %594  ;;  %427 = vst.msk [vmem:[%s313_s27 + $0x10] sm:$0xff] %vm424_vm1, %v422_v10 }
 0x211   : > { %v423_v13 = vmul.f32 %v595_v11, %v403_v12 }
 0x213   : > { %428 = vst.msk [vmem:[%s313_s27 + $0x18] sm:$0xff] %vm424_vm1, %v423_v13 }
 0x214 PF: > { %p15_p3 = scmp.ge.s32.totalorder %s712_s21, 4   ;;  %s834_s17 = smov %s650_s18 }
 0x215   : > { %s835_s18 = smov %s654_s19  ;;  %s836_s19 = smov %s722_s24 }
 0x216   : > { %s837_s20 = smov %s712_s21  ;;  %17 = sbr.rel (!%p15_p3) target bundleno = 5 (0x5), region = 82 }
 0x21d   :  { %451 = vsyncpa [#allocation4], 1 }
 0x21e   :  { %453 = vsyncpa [#allocation4 + $0x1], 1 }

</bundles_post_ra>
